<compile_context>
chip_gen: v7x
topology: tpu7x:2x2x1
jax: 0.10.0
libtpu: 0.0.40
codegen_flags: <defaults>
</compile_context>

<pallas_src>
import functools

import jax
import jax.numpy as jnp
from jax.experimental import pallas as pl
from jax.experimental.pallas import tpu as pltpu


def _round_up(x: int, m: int) -> int:
    return (x + m - 1) // m * m


def _pick_tile(padded_dim: int, align: int, max_tile: int) -> int:
    """Largest multiple of `align` that divides `padded_dim` and is <= max_tile.

    `padded_dim` must be a multiple of `align`, so the result is >= align and
    no zero-padding beyond the basic (8,128) alignment is ever introduced.
    """
    if padded_dim <= max_tile:
        return padded_dim
    t = max_tile - (max_tile % align)
    while t >= align:
        if padded_dim % t == 0:
            return t
        t -= align
    return align


def _linear_sigmoid_kernel(x_ref, w_ref, b_ref, o_ref):
    # Single-K-step path: one MXU matmul + bias + sigmoid per output tile.
    # x_ref: (tm, K)  w_ref: (K, tn)  b_ref: (1, tn)  o_ref: (tm, tn)
    y = jnp.dot(x_ref[...], w_ref[...], preferred_element_type=jnp.float32)
    o_ref[...] = jax.nn.sigmoid(y + b_ref[...]).astype(o_ref.dtype)


def _linear_sigmoid_kernel_ksplit(x_ref, w_ref, b_ref, o_ref, acc_ref):
    # K-split path: f32 VMEM accumulator, bias + sigmoid epilogue at last K.
    # x_ref: (tm, tk)  w_ref: (tk, tn)  b_ref: (1, tn)  o_ref/acc_ref: (tm, tn)
    k = pl.program_id(2)

    @pl.when(k == 0)
    def _init():
        acc_ref[...] = jnp.zeros_like(acc_ref)

    acc_ref[...] += jnp.dot(x_ref[...], w_ref[...],
                            preferred_element_type=jnp.float32)

    @pl.when(k == pl.num_programs(2) - 1)
    def _epilogue():
        o_ref[...] = jax.nn.sigmoid(acc_ref[...] + b_ref[...]).astype(o_ref.dtype)


@functools.partial(jax.jit, static_argnames=("vmem_budget_bytes",))
def linear_sigmoid(x, weight, bias, *, vmem_budget_bytes=40 * 1024 * 1024):
    """y = sigmoid(x @ weight.T + bias).

    x: [B, inp], weight: [out, inp] (PyTorch convention), bias: [out].
    """
    B, inp = x.shape
    out = weight.shape[0]

    # Minimal alignment padding (8 sublanes / 128 lanes).
    Bp = _round_up(B, 8)
    Kp = _round_up(inp, 128)
    Np = _round_up(out, 128)

    # Tiles are exact divisors of the padded dims -> zero wasted work.
    tm = _pick_tile(Bp, 8, 512)
    tn = _pick_tile(Np, 128, 512)

    # v7x dual-TC / megacore: ensure >= 2 parallel output tiles in the common
    # small-batch case so both TensorCores get work.
    if (Bp // tm) * (Np // tn) < 2 and Np >= 256:
        tn = _pick_tile(Np, 128, max(128, Np // 2))

    itemsize = 4  # f32

    def footprint(tk, with_acc):
        # Double-buffered input/output blocks (+ f32 accumulator scratch).
        f = 2 * (tm * tk + tk * tn + tm * tn) * itemsize
        if with_acc:
            f += tm * tn * itemsize
        return f

    # Wrapper-side prep: pad to alignment; pre-transpose the weight to (Kp, Np)
    # (single fused pad+transpose pass) so the MXU sees a natural (m,k)x(k,n)
    # contraction with no in-kernel transposes.  Hoist/cache wp, bp across
    # calls when reusing the same weights (inference).
    xp = x if (Bp == B and Kp == inp) else jnp.pad(x, ((0, Bp - B), (0, Kp - inp)))
    wp = jnp.pad(weight, ((0, Np - out), (0, Kp - inp))).T          # (Kp, Np)
    bp = jnp.pad(bias, (0, Np - out)).reshape(1, Np)                # (1, Np)

    grid_m = Bp // tm
    grid_n = Np // tn
    cparams = dict(vmem_limit_bytes=48 * 1024 * 1024)

    if footprint(Kp, with_acc=False) <= vmem_budget_bytes:
        # K fits in VMEM: collapse the reduction axis -> 2-D grid, no scratch,
        # no accumulator round-trip, fewer grid steps.
        cost = pl.CostEstimate(
            flops=2 * Bp * Kp * Np,
            transcendentals=Bp * Np,
            bytes_accessed=itemsize * (Bp * Kp + grid_m * Kp * Np + Np + Bp * Np),
        )
        yp = pl.pallas_call(
            _linear_sigmoid_kernel,
            out_shape=jax.ShapeDtypeStruct((Bp, Np), x.dtype),
            grid=(grid_m, grid_n),
            in_specs=[
                pl.BlockSpec((tm, Kp), lambda i, j: (i, 0)),   # x tile
                pl.BlockSpec((Kp, tn), lambda i, j: (0, j)),   # W^T tile
                pl.BlockSpec((1, tn), lambda i, j: (0, j)),    # bias tile
            ],
            out_specs=pl.BlockSpec((tm, tn), lambda i, j: (i, j)),
            compiler_params=pltpu.CompilerParams(
                dimension_semantics=("parallel", "parallel"), **cparams),
            cost_estimate=cost,
        )(xp, wp, bp)
    else:
        # Large K: 3-D grid with K innermost ("arbitrary") + f32 accumulator.
        tk = _pick_tile(Kp, 128, 1024)
        while footprint(tk, with_acc=True) > vmem_budget_bytes and tk > 128:
            tk = _pick_tile(Kp, 128, tk - 128)
        cost = pl.CostEstimate(
            flops=2 * Bp * Kp * Np,
            transcendentals=Bp * Np,
            bytes_accessed=itemsize * (grid_n * Bp * Kp + grid_m * Kp * Np
                                       + Np + Bp * Np),
        )
        yp = pl.pallas_call(
            _linear_sigmoid_kernel_ksplit,
            out_shape=jax.ShapeDtypeStruct((Bp, Np), x.dtype),
            grid=(grid_m, grid_n, Kp // tk),
            in_specs=[
                pl.BlockSpec((tm, tk), lambda i, j, k: (i, k)),   # x tile
                pl.BlockSpec((tk, tn), lambda i, j, k: (k, j)),   # W^T tile
                pl.BlockSpec((1, tn), lambda i, j, k: (0, j)),    # bias tile
            ],
            out_specs=pl.BlockSpec((tm, tn), lambda i, j, k: (i, j)),
            scratch_shapes=[pltpu.VMEM((tm, tn), jnp.float32)],
            compiler_params=pltpu.CompilerParams(
                dimension_semantics=("parallel", "parallel", "arbitrary"),
                **cparams),
            cost_estimate=cost,
        )(xp, wp, bp)

    return yp[:B, :out]


def _reference(x, w, b):
    return jax.nn.sigmoid(
        jnp.dot(x, w.T, precision=jax.lax.Precision.HIGHEST) + b)


if __name__ == "__main__":
    key = jax.random.PRNGKey(0)

    # --- Check 1: small shapes matching the original module usage ---
    k_x, k_w, k_b = jax.random.split(key, 3)
    batch, inp, out = 8, 32, 64
    bound = inp ** -0.5
    w1 = jax.random.uniform(k_w, (out, inp), jnp.float32, -bound, bound)
    b1 = jax.random.uniform(k_b, (out,), jnp.float32, -bound, bound)
    x1 = jax.random.normal(k_x, (batch, inp), jnp.float32)

    y1 = linear_sigmoid(x1, w1, b1)
    jax.block_until_ready(y1)
    assert y1.shape == (batch, out)
    assert jnp.allclose(y1, _reference(x1, w1, b1), atol=2e-5, rtol=1e-5)

    # --- Check 2: unaligned shapes (padding, tn-split, K-collapse path) ---
    k_x2, k_w2, k_b2 = jax.random.split(jax.random.PRNGKey(1), 3)
    B2, inp2, out2 = 24, 640, 384
    bound2 = inp2 ** -0.5
    w2 = jax.random.uniform(k_w2, (out2, inp2), jnp.float32, -bound2, bound2)
    b2 = jax.random.uniform(k_b2, (out2,), jnp.float32, -bound2, bound2)
    x2 = jax.random.normal(k_x2, (B2, inp2), jnp.float32)

    y2 = linear_sigmoid(x2, w2, b2)
    jax.block_until_ready(y2)
    assert y2.shape == (B2, out2)
    assert jnp.allclose(y2, _reference(x2, w2, b2), atol=2e-5, rtol=1e-5)

    # --- Check 3: force the 3-D K-split accumulator path via a tiny budget ---
    k_x3, k_w3, k_b3 = jax.random.split(jax.random.PRNGKey(2), 3)
    B3, inp3, out3 = 32, 1024, 256
    bound3 = inp3 ** -0.5
    w3 = jax.random.uniform(k_w3, (out3, inp3), jnp.float32, -bound3, bound3)
    b3 = jax.random.uniform(k_b3, (out3,), jnp.float32, -bound3, bound3)
    x3 = jax.random.normal(k_x3, (B3, inp3), jnp.float32)

    y3 = linear_sigmoid(x3, w3, b3, vmem_budget_bytes=512 * 1024)
    jax.block_until_ready(y3)
    assert y3.shape == (B3, out3)
    assert jnp.allclose(y3, _reference(x3, w3, b3), atol=2e-5, rtol=1e-5)

    print("KERNEL_OK")
</pallas_src>

<mosaic_0001>
module attributes {stable_mosaic.version = 11 : i64} {
  func.func @_linear_sigmoid_kernel(%arg0: i32, %arg1: i32, %arg2: memref<8x128xf32, #tpu.memory_space<vmem>>, %arg3: memref<128x128xf32, #tpu.memory_space<vmem>>, %arg4: memref<1x128xf32, #tpu.memory_space<vmem>>, %arg5: memref<8x128xf32, #tpu.memory_space<vmem>>) attributes {dimension_semantics = [#tpu.dimension_semantics<parallel>, #tpu.dimension_semantics<parallel>], iteration_bounds = array<i64: 1, 1>, scalar_prefetch = 0 : i64, scratch_operands = 0 : i64, tpu.core_type = #tpu.core_type<tc>, window_params = [{transform_indices = @transform_0, window_bounds = array<i64: 8, 128>}, {transform_indices = @transform_1, window_bounds = array<i64: 128, 128>}, {transform_indices = @transform_2, window_bounds = array<i64: 1, 128>}, {transform_indices = @transform_3, window_bounds = array<i64: 8, 128>}]} {
    %c0 = arith.constant 0 : index
    %c0_0 = arith.constant 0 : index
    %0 = vector.load %arg2[%c0, %c0_0] : memref<8x128xf32, #tpu.memory_space<vmem>>, vector<8x128xf32>
    %c0_1 = arith.constant 0 : index
    %c0_2 = arith.constant 0 : index
    %1 = vector.load %arg3[%c0_1, %c0_2] : memref<128x128xf32, #tpu.memory_space<vmem>>, vector<128x128xf32>
    %cst = arith.constant dense<0.000000e+00> : vector<8x128xf32>
    %2 = tpu.matmul %0, %1, %cst {dimension_numbers = #tpu.dot_dimension_numbers<[1], [0], [0], [1], [0, 0, 1, 1], [], []>} : vector<8x128xf32>, vector<128x128xf32>, vector<8x128xf32> -> vector<8x128xf32>
    %c0_3 = arith.constant 0 : index
    %c0_4 = arith.constant 0 : index
    %3 = vector.load %arg4[%c0_3, %c0_4] : memref<1x128xf32, #tpu.memory_space<vmem>>, vector<1x128xf32>
    %4 = vector.broadcast %3 : vector<1x128xf32> to vector<8x128xf32>
    %5 = arith.addf %2, %4 : vector<8x128xf32>
    %6 = arith.negf %5 : vector<8x128xf32>
    %7 = math.exp %6 : vector<8x128xf32>
    %cst_5 = arith.constant 1.000000e+00 : f32
    %8 = vector.broadcast %cst_5 : f32 to vector<8x128xf32>
    %9 = arith.addf %8, %7 : vector<8x128xf32>
    %10 = arith.divf %8, %9 : vector<8x128xf32>
    %c0_6 = arith.constant 0 : index
    %c0_7 = arith.constant 0 : index
    %11 = vector.load %arg5[%c0_6, %c0_7] : memref<8x128xf32, #tpu.memory_space<vmem>>, vector<8x128xf32>
    tpu.vector_store %arg5[%c0_6, %c0_7], %10 {strides = array<i32>} : memref<8x128xf32, #tpu.memory_space<vmem>>, vector<8x128xf32>,
    return
  }
  func.func @transform_0(%arg0: i32, %arg1: i32) -> (i32, i32) {
    %c0_i32 = arith.constant 0 : i32
    %c0_i32_0 = arith.constant 0 : i32
    return %arg0, %c0_i32 : i32, i32
  }
  func.func @transform_1(%arg0: i32, %arg1: i32) -> (i32, i32) {
    %c0_i32 = arith.constant 0 : i32
    %c0_i32_0 = arith.constant 0 : i32
    return %c0_i32, %arg1 : i32, i32
  }
  func.func @transform_2(%arg0: i32, %arg1: i32) -> (i32, i32) {
    %c0_i32 = arith.constant 0 : i32
    %c0_i32_0 = arith.constant 0 : i32
    return %c0_i32, %arg1 : i32, i32
  }
  func.func @transform_3(%arg0: i32, %arg1: i32) -> (i32, i32) {
    %c0_i32 = arith.constant 0 : i32
    return %arg0, %arg1 : i32, i32
  }
}

</mosaic_0001>

<bundles_post_ra>
// kernel: linear_sigmoid.1
= control target key start
LH: loop header
LB: loop body
LE: loop exit
PB: predicated region body
PF: predicated region fallthrough
CT: control target
= control target key end

     0   :  { %v240_v3 = vmov 0.0|0.0   ;;  %vm241_vm0 = vmmov 0   ;;  %v242_v6 = vmov 0.0   ;;  %s330_s0 = inlined_call_operand.vmem [shape: f32[8,128], index: 0, kind: input, shape index: {}]   ;;  %s331_s1 = inlined_call_operand.vmem [shape: f32[128,128], index: 1, kind: input, shape index: {}]   ;;  %s332_s2 = inlined_call_operand.vmem [shape: f32[1,128], index: 2, kind: input, shape index: {}]   ;;  %s333_s3 = inlined_call_operand.hbm [shape: f32[8,128], index: 3, kind: output, shape index: {}]  }
   0x1   :  { %v16_v0 = vld [vmem:[%s331_s1] sm:$0xff]  ;;  %v17_v1 = vld [vmem:[%s331_s1 + $0x8] sm:$0xff]  ;;  %v18_v2 = vld [vmem:[%s331_s1 + $0x10] sm:$0xff]  ;;  %184 = vmatprep.subr.bf16.mxu0 %v240_v3  ;;  %181 = vmatprep.mubr.msk.f32.mxu0 %vm241_vm0, %v242_v6 }
   0x2   :  { %v185_v4 = vpack.c.bf16 %v17_v1, %v16_v0  ;;  %v19_v5 = vld [vmem:[%s331_s1 + $0x18] sm:$0xff]  ;;  %v20_v8 = vld [vmem:[%s331_s1 + $0x20] sm:$0xff]  ;;  %v21_v9 = vld [vmem:[%s331_s1 + $0x28] sm:$0xff] }
   0x3   :  { %v188_v7 = vpack.c.bf16 %v19_v5, %v18_v2 }
   0x4   :  { %186 = vmatpush3.bf16.msra.mxu0 %v185_v4 }
   0x5   :  { %187 = vmatprep.subr.bf16.mxu0 %v240_v3 }
   0x6   :  { %8 = vsyncpa [#allocation3], 0  ;;  %v191_v10 = vpack.c.bf16 %v21_v9, %v20_v8  ;;  %v22_v11 = vld [vmem:[%s331_s1 + $0x30] sm:$0xff]  ;;  %v23_v12 = vld [vmem:[%s331_s1 + $0x38] sm:$0xff] }
   0x7   :  { %v194_v13 = vpack.c.bf16 %v23_v12, %v22_v11  ;;  %v24_v14 = vld [vmem:[%s331_s1 + $0x40] sm:$0xff]  ;;  %v25_v15 = vld [vmem:[%s331_s1 + $0x48] sm:$0xff]  ;;  %v26_v17 = vld [vmem:[%s331_s1 + $0x50] sm:$0xff] }
   0x8   :  { %189 = vmatpush3.bf16.msra.mxu0 %v188_v7  ;;  %v197_v16 = vpack.c.bf16 %v25_v15, %v24_v14  ;;  %v27_v18 = vld [vmem:[%s331_s1 + $0x58] sm:$0xff]  ;;  %v28_v20 = vld [vmem:[%s331_s1 + $0x60] sm:$0xff]  ;;  %v29_v21 = vld [vmem:[%s331_s1 + $0x68] sm:$0xff] }
   0x9   :  { %190 = vmatprep.subr.bf16.mxu0 %v240_v3  ;;  %v200_v19 = vpack.c.bf16 %v27_v18, %v26_v17  ;;  %v203_v22 = vpack.c.bf16 %v29_v21, %v28_v20  ;;  %v30_v23 = vld [vmem:[%s331_s1 + $0x70] sm:$0xff]  ;;  %v31_v24 = vld [vmem:[%s331_s1 + $0x78] sm:$0xff]  ;;  %v15_v26 = vld [vmem:[%s330_s0] sm:$0xff]  ;;  %s243_s1 = smov [#allocation2]  }
   0xa   :  { %v206_v25 = vpack.c.bf16 %v31_v24, %v30_v23  ;;  %v130_v27 = vld [vmem:[%s332_s2] ss:$0 sm:$0xff]  ;;  %s122_s21 = sshll.u32 %s243_s1, 4  ;;  %s123_s21 = int_to_ptr.vmem [resolvable:$true] %s122_s21 }
   0xb   :  { %s216_s22 = scalar_lea.vmem %s123_s21, 128  ;;  %p221_p1 = scmp.lt.s32.totalorder %s123_s21, %s123_s21 }
   0xc   :  { %192 = vmatpush3.bf16.msra.mxu0 %v191_v10  ;;  %p217_p0 = scmp.ne.s32.totalorder %s123_s21, %s216_s22  ;;  %p222_p2 = scmp.lt.s32.totalorder %s216_s22, %s216_s22 }
   0xd   :  { %193 = vmatprep.subr.bf16.mxu0 %v240_v3 }
   0xe   :  { %p223_p3 = por %p222_p2, %p221_p1 }
  0x10   :  { %195 = vmatpush3.bf16.msra.mxu0 %v194_v13  ;;  %p224_p4 = pnand %p223_p3, %p217_p0 }
  0x11   :  { %196 = vmatprep.subr.bf16.mxu0 %v240_v3 }
  0x14   :  { %198 = vmatpush3.bf16.msra.mxu0 %v197_v16 }
  0x15   :  { %199 = vmatprep.subr.bf16.mxu0 %v240_v3 }
  0x18   :  { %201 = vmatpush3.bf16.msra.mxu0 %v200_v19 }
  0x19   :  { %202 = vmatprep.subr.bf16.mxu0 %v240_v3 }
  0x1c   :  { %204 = vmatpush3.bf16.msra.mxu0 %v203_v22 }
  0x1d   :  { %205 = vmatprep.subr.bf16.mxu0 %v240_v3 }
  0x20   :  { %207 = vmatpush3.bf16.msra.mxu0 %v206_v25 }
  0x23   :  { %182 = vmatmul.mubr.f32.vlgmr.msra.gmra.mrb[0].mxu0 %v15_v26 }
  0xf6   :  { %v105_v28 = vpop.f32.mrb[0].mxu0 }
  0xf7   :  { %v106_v29 = vadd.f32 %v130_v27, %v105_v28  ;;  %v183_v30 = vpop.f32.mrb[1].mxu0 }
  0xf9   :  { %v131_v31 = vmul.f32 -1.442695, %v106_v29 }
  0xfb   :  { %212 = vpow2.f32 %v131_v31 }
 0x105   :  { %v213_v32 = vpop.eup %212 }
 0x106   :  { %v112_v33 = vadd.f32 1.0, %v213_v32 }
 0x108   :  { %214 = vrcp.f32 %v112_v33 }
 0x112   :  { %v215_v34 = vpop.eup %214 }
 0x113   :  { %115 = vst [vmem:[#allocation2] sm:$0xff] %v215_v34 }
 0x114   :  { %227 = shalt.err (!%p224_p4)
}
 0x115   :  { %s228_s23 = scalar_lea.hbm %s333_s3, 128 }
 0x116   :  { %p229_p5 = scmp.ne.s32.totalorder %s333_s3, %s228_s23  ;;  %p232_p6 = scmp.lt.u32.totalorder %s228_s23, %s333_s3 }
 0x118   :  { %p234_p7 = pnand %p232_p6, %p229_p5 }
 0x11a   :  { %237 = shalt.err (!%p234_p7)
}
 0x11b   :  { %125 = dma.vmem_to_hbm [thread:$0]  %s123_s21, 128, %s333_s3, [#allocation3]  }
 0x11c   :  { %238 = dma.done.wait [#allocation3], 128  }
 0x11d   :  { %239 = vsyncadd [#allocation3], 4294967168 }
 0x11e   :  { %129 = vsyncpa [#allocation3], 1 }

</bundles_post_ra>
